<compile_context>
chip_gen: v7x
topology: tpu7x:2x2x1
jax: 0.10.0
libtpu: 0.0.40
codegen_flags: <defaults>
</compile_context>

<pallas_src>
import functools

import jax
import jax.numpy as jnp
from jax.experimental import pallas as pl
from jax.experimental.pallas import tpu as pltpu

HIDDEN = 128
LANE = 128
SUBLANE = 8
MAX_BATCH_BLOCK = 1024  # rows per grid step once the batch gets large


def _round_up(x, m):
    return (x + m - 1) // m * m


def pack_dqn_params(params, n_states, n_actions):
    """Pack (w1,b1,w2,b2,w3,b3) into a single [R,128] f32 buffer (one DMA).

    Row layout (every section start is a multiple of 8 -> aligned f32 tiles):
      [0          : k_pad)        w1 zero-padded from [n_states,128] to [k_pad,128]
      [k_pad      : k_pad+128)    w2 [128,128]
      [k_pad+128  : k_pad+256)    w3 zero-padded from [128,n_actions] to [128,128]
      [k_pad+256  : k_pad+264)    bias block: row0=b1, row1=b2, row2=b3 (padded), rest 0
    """
    k_pad = _round_up(max(n_states, 1), SUBLANE)
    a_pad = LANE  # lane-dense action dim

    w1 = params["w1"].astype(jnp.float32)
    w2 = params["w2"].astype(jnp.float32)
    w3 = params["w3"].astype(jnp.float32)
    b1 = params["b1"].reshape(1, HIDDEN).astype(jnp.float32)
    b2 = params["b2"].reshape(1, HIDDEN).astype(jnp.float32)
    b3 = params["b3"].reshape(1, -1).astype(jnp.float32)

    w1p = jnp.zeros((k_pad, HIDDEN), jnp.float32).at[:n_states, :].set(w1)
    w3p = jnp.zeros((HIDDEN, a_pad), jnp.float32).at[:, :n_actions].set(w3)
    bias_block = jnp.zeros((SUBLANE, a_pad), jnp.float32)
    bias_block = bias_block.at[0, :HIDDEN].set(b1[0])
    bias_block = bias_block.at[1, :HIDDEN].set(b2[0])
    bias_block = bias_block.at[2, :n_actions].set(b3[0])

    packed = jnp.concatenate([w1p, w2, w3p, bias_block], axis=0)
    return packed, k_pad, a_pad


def _dqn_kernel(x_ref, p_ref, o_ref, *, k_pad, compute_dtype):
    r_w2 = k_pad
    r_w3 = k_pad + HIDDEN
    r_b = k_pad + 2 * HIDDEN

    # Static, tile-aligned views into the packed parameter slab.
    w1 = p_ref[0:r_w2, :].astype(compute_dtype)        # [k_pad, 128]
    w2 = p_ref[r_w2:r_w3, :].astype(compute_dtype)     # [128, 128]
    w3 = p_ref[r_w3:r_b, :].astype(compute_dtype)      # [128, 128] (extra cols are 0)
    bias = p_ref[r_b:r_b + SUBLANE, :]                  # [8, 128] f32
    b1 = bias[0:1, :]
    b2 = bias[1:2, :]
    b3 = bias[2:3, :]

    x = x_ref[...].astype(compute_dtype)                 # [block_b, k_pad]

    # Layer 1: Linear + ReLU (f32 accumulation / f32 elementwise on every chip).
    h1 = jnp.dot(x, w1, preferred_element_type=jnp.float32) + b1
    h1 = jnp.maximum(h1, 0.0)
    # Layer 2: Linear + ReLU.
    h2 = jnp.dot(h1.astype(compute_dtype), w2, preferred_element_type=jnp.float32) + b2
    h2 = jnp.maximum(h2, 0.0)
    # Layer 3: Linear (lane-dense output; padded action columns stay exactly 0).
    out = jnp.dot(h2.astype(compute_dtype), w3, preferred_element_type=jnp.float32) + b3
    o_ref[...] = out.astype(o_ref.dtype)


def dqn_forward(x, params, *, compute_dtype=jnp.float32):
    """x: [B, n_states] float32. params: dict of w1,b1,w2,b2,w3,b3 (w: [in,out])."""
    n_states = params["w1"].shape[0]
    n_actions = params["w3"].shape[1]
    B = x.shape[0]

    packed, k_pad, a_pad = pack_dqn_params(params, n_states, n_actions)
    r_total = packed.shape[0]

    # Batch padding / batch-grid decision. Small/medium batches stay as a single
    # fused block (the grid is a sequential loop on v5e/v6e); very large batches
    # get a parallel batch grid (2 TCs on v7x, bounded per-step VMEM).
    if B <= MAX_BATCH_BLOCK:
        b_pad = _round_up(B, SUBLANE)
        block_b = b_pad
    else:
        b_pad = _round_up(B, MAX_BATCH_BLOCK)
        block_b = MAX_BATCH_BLOCK
    grid = (b_pad // block_b,)

    xp = jnp.zeros((b_pad, k_pad), jnp.float32).at[:B, :n_states].set(
        x.astype(jnp.float32))

    # VMEM budget: double-buffered blocks + f32 intermediates + headroom.
    x_bytes = block_b * k_pad * 4
    p_bytes = r_total * LANE * 4
    o_bytes = block_b * a_pad * 4
    act_bytes = 2 * block_b * HIDDEN * 4
    vmem_limit = int(2 * (x_bytes + p_bytes + o_bytes) + act_bytes + (8 << 20))

    cost = pl.CostEstimate(
        flops=2 * b_pad * (k_pad * HIDDEN + HIDDEN * HIDDEN + HIDDEN * a_pad),
        transcendentals=0,
        bytes_accessed=xp.size * 4 + packed.size * 4 + b_pad * a_pad * 4,
    )

    kernel = functools.partial(_dqn_kernel, k_pad=k_pad, compute_dtype=compute_dtype)

    out_padded = pl.pallas_call(
        kernel,
        out_shape=jax.ShapeDtypeStruct((b_pad, a_pad), jnp.float32),
        grid=grid,
        in_specs=[
            pl.BlockSpec((block_b, k_pad), lambda i: (i, 0)),   # x tile per grid step
            pl.BlockSpec((r_total, LANE), lambda i: (0, 0)),    # params: VMEM-resident
        ],
        out_specs=pl.BlockSpec((block_b, a_pad), lambda i: (i, 0)),
        compiler_params=pltpu.CompilerParams(
            dimension_semantics=("parallel",),
            vmem_limit_bytes=vmem_limit,
        ),
        cost_estimate=cost,
    )(xp, packed)

    # Strip batch/action padding (padded action lanes are exact zeros).
    return out_padded[:B, :n_actions]


def init_dqn_params(key, n_states, n_actions):
    """PyTorch nn.Linear default init: U[-1/sqrt(fan_in), 1/sqrt(fan_in)]."""
    ks = jax.random.split(key, 6)

    def linear(kw, kb, fan_in, fan_out):
        bound = 1.0 / jnp.sqrt(float(fan_in))
        w = jax.random.uniform(kw, (fan_in, fan_out), jnp.float32, -bound, bound)
        b = jax.random.uniform(kb, (1, fan_out), jnp.float32, -bound, bound)
        return w, b

    w1, b1 = linear(ks[0], ks[1], n_states, HIDDEN)
    w2, b2 = linear(ks[2], ks[3], HIDDEN, HIDDEN)
    w3, b3 = linear(ks[4], ks[5], HIDDEN, n_actions)
    return dict(w1=w1, b1=b1, w2=w2, b2=b2, w3=w3, b3=b3)


def dqn_reference(x, p):
    h1 = jnp.maximum(x @ p["w1"] + p["b1"], 0.0)
    h2 = jnp.maximum(h1 @ p["w2"] + p["b2"], 0.0)
    return h2 @ p["w3"] + p["b3"]


if __name__ == "__main__":
    key = jax.random.PRNGKey(0)
    k_param, k_x = jax.random.split(key)

    batch, n_states, n_actions = 8, 4, 2  # CartPole-like dims
    params = init_dqn_params(k_param, n_states, n_actions)
    x = jax.random.normal(k_x, (batch, n_states), jnp.float32)

    ref = dqn_reference(x, params)

    # f32 path: exact-ish match to the reference MLP.
    out = jax.block_until_ready(dqn_forward(x, params))
    assert out.shape == (batch, n_actions)
    assert jnp.allclose(out, ref, atol=1e-5, rtol=1e-5), "f32 mismatch vs reference"

    # bf16-compute path (MXU-dtype optimization for v6e/v7x), f32 accumulation.
    out_bf16 = jax.block_until_ready(
        dqn_forward(x, params, compute_dtype=jnp.bfloat16))
    assert out_bf16.shape == (batch, n_actions)
    assert jnp.allclose(out_bf16, ref, atol=5e-2, rtol=5e-2), "bf16 mismatch vs reference"

    print("KERNEL_OK")
</pallas_src>

<mosaic_0001>
module attributes {stable_mosaic.version = 11 : i64} {
  func.func @_dqn_kernel(%arg0: i32, %arg1: memref<8x8xf32, #tpu.memory_space<vmem>>, %arg2: memref<272x128xf32, #tpu.memory_space<vmem>>, %arg3: memref<8x128xf32, #tpu.memory_space<vmem>>) attributes {dimension_semantics = [#tpu.dimension_semantics<parallel>], iteration_bounds = array<i64: 1>, scalar_prefetch = 0 : i64, scratch_operands = 0 : i64, tpu.core_type = #tpu.core_type<tc>, window_params = [{transform_indices = @transform_0, window_bounds = array<i64: 8, 8>}, {pipeline_mode = #tpu.pipeline_mode<synchronous>, transform_indices = @transform_1, window_bounds = array<i64: 272, 128>}, {transform_indices = @transform_2, window_bounds = array<i64: 8, 128>}]} {
    %c0 = arith.constant 0 : index
    %c0_0 = arith.constant 0 : index
    %0 = vector.load %arg2[%c0, %c0_0] : memref<272x128xf32, #tpu.memory_space<vmem>>, vector<8x128xf32>
    %c8 = arith.constant 8 : index
    %c0_1 = arith.constant 0 : index
    %1 = vector.load %arg2[%c8, %c0_1] : memref<272x128xf32, #tpu.memory_space<vmem>>, vector<128x128xf32>
    %c136 = arith.constant 136 : index
    %c0_2 = arith.constant 0 : index
    %2 = vector.load %arg2[%c136, %c0_2] : memref<272x128xf32, #tpu.memory_space<vmem>>, vector<128x128xf32>
    %c264 = arith.constant 264 : index
    %c0_3 = arith.constant 0 : index
    %3 = vector.load %arg2[%c264, %c0_3] : memref<272x128xf32, #tpu.memory_space<vmem>>, vector<8x128xf32>
    %4 = vector.extract_strided_slice %3 {offsets = [0, 0], sizes = [1, 128], strides = [1, 1]} : vector<8x128xf32> to vector<1x128xf32>
    %5 = vector.extract_strided_slice %3 {offsets = [1, 0], sizes = [1, 128], strides = [1, 1]} : vector<8x128xf32> to vector<1x128xf32>
    %6 = vector.extract_strided_slice %3 {offsets = [2, 0], sizes = [1, 128], strides = [1, 1]} : vector<8x128xf32> to vector<1x128xf32>
    %c0_4 = arith.constant 0 : index
    %c0_5 = arith.constant 0 : index
    %7 = vector.load %arg1[%c0_4, %c0_5] : memref<8x8xf32, #tpu.memory_space<vmem>>, vector<8x8xf32>
    %cst = arith.constant dense<0.000000e+00> : vector<8x128xf32>
    %8 = tpu.matmul %7, %0, %cst {dimension_numbers = #tpu.dot_dimension_numbers<[1], [0], [0], [1], [0, 0, 1, 1], [], []>} : vector<8x8xf32>, vector<8x128xf32>, vector<8x128xf32> -> vector<8x128xf32>
    %9 = vector.broadcast %4 : vector<1x128xf32> to vector<8x128xf32>
    %10 = arith.addf %8, %9 : vector<8x128xf32>
    %cst_6 = arith.constant 0.000000e+00 : f32
    %11 = vector.broadcast %cst_6 : f32 to vector<8x128xf32>
    %12 = arith.maximumf %10, %11 : vector<8x128xf32>
    %cst_7 = arith.constant dense<0.000000e+00> : vector<8x128xf32>
    %13 = tpu.matmul %12, %1, %cst_7 {dimension_numbers = #tpu.dot_dimension_numbers<[1], [0], [0], [1], [0, 0, 1, 1], [], []>} : vector<8x128xf32>, vector<128x128xf32>, vector<8x128xf32> -> vector<8x128xf32>
    %14 = vector.broadcast %5 : vector<1x128xf32> to vector<8x128xf32>
    %15 = arith.addf %13, %14 : vector<8x128xf32>
    %cst_8 = arith.constant 0.000000e+00 : f32
    %16 = vector.broadcast %cst_8 : f32 to vector<8x128xf32>
    %17 = arith.maximumf %15, %16 : vector<8x128xf32>
    %cst_9 = arith.constant dense<0.000000e+00> : vector<8x128xf32>
    %18 = tpu.matmul %17, %2, %cst_9 {dimension_numbers = #tpu.dot_dimension_numbers<[1], [0], [0], [1], [0, 0, 1, 1], [], []>} : vector<8x128xf32>, vector<128x128xf32>, vector<8x128xf32> -> vector<8x128xf32>
    %19 = vector.broadcast %6 : vector<1x128xf32> to vector<8x128xf32>
    %20 = arith.addf %18, %19 : vector<8x128xf32>
    %c0_10 = arith.constant 0 : index
    %c0_11 = arith.constant 0 : index
    %21 = vector.load %arg3[%c0_10, %c0_11] : memref<8x128xf32, #tpu.memory_space<vmem>>, vector<8x128xf32>
    tpu.vector_store %arg3[%c0_10, %c0_11], %20 {strides = array<i32>} : memref<8x128xf32, #tpu.memory_space<vmem>>, vector<8x128xf32>,
    return
  }
  func.func @transform_0(%arg0: i32) -> (i32, i32) {
    %c0_i32 = arith.constant 0 : i32
    %c0_i32_0 = arith.constant 0 : i32
    return %arg0, %c0_i32 : i32, i32
  }
  func.func @transform_1(%arg0: i32) -> (i32, i32) {
    %c0_i32 = arith.constant 0 : i32
    %c0_i32_0 = arith.constant 0 : i32
    %c0_i32_1 = arith.constant 0 : i32
    return %c0_i32, %c0_i32_0 : i32, i32
  }
  func.func @transform_2(%arg0: i32) -> (i32, i32) {
    %c0_i32 = arith.constant 0 : i32
    %c0_i32_0 = arith.constant 0 : i32
    return %arg0, %c0_i32 : i32, i32
  }
}

</mosaic_0001>

<bundles_post_ra>
// kernel: tpu_custom_call.1
= control target key start
LH: loop header
LB: loop body
LE: loop exit
PB: predicated region body
PF: predicated region fallthrough
CT: control target
= control target key end

     0   :  { %7 = vsyncpa [#allocation3], 0  ;;  %s643_s0 = inlined_call_operand.hbm [shape: f32[8,8], index: 0, kind: input, shape index: {}]   ;;  %s644_s1 = inlined_call_operand.hbm [shape: f32[272,128], index: 1, kind: input, shape index: {}]   ;;  %s645_s2 = inlined_call_operand.hbm [shape: f32[8,128], index: 2, kind: output, shape index: {}]  }
   0x1   :  { %8 = vsyncpa [#allocation6], 0 }
   0x2   :  { %9 = vsyncpa [#allocation4], 0  ;;  %s558_s9 = smov [#allocation2]   ;;  %s559_s11 = smov [#allocation5]  }
   0x3   :  { %s16_s10 = sshll.u32 %s558_s9, 4  ;;  %s25_s12 = sshll.u32 %s559_s11, 4  ;;  %s17_s10 = int_to_ptr.vmem [resolvable:$true] %s16_s10  ;;  %s581_s12 = int_to_ptr.vmem [resolvable:$true] %s25_s12 }
   0x4   :  { %s486_s15 = scalar_lea.hbm %s643_s0, 128 }
   0x5   :  { %p487_p0 = scmp.ne.s32.totalorder %s643_s0, %s486_s15  ;;  %p490_p1 = scmp.lt.u32.totalorder %s486_s15, %s643_s0 }
   0x7   :  { %p492_p2 = pnand %p490_p1, %p487_p0 }
   0x9   :  { %495 = shalt.err (!%p492_p2)
}
   0xa   :  { %s496_s20 = scalar_lea.vmem %s17_s10, 128  ;;  %p501_p4 = scmp.lt.s32.totalorder %s17_s10, %s17_s10 }
   0xb   :  { %p497_p3 = scmp.ne.s32.totalorder %s17_s10, %s496_s20  ;;  %p502_p5 = scmp.lt.s32.totalorder %s496_s20, %s496_s20 }
   0xd   :  { %p503_p6 = por %p502_p5, %p501_p4 }
   0xf   :  { %p504_p7 = pnand %p503_p6, %p497_p3 }
  0x11   :  { %507 = shalt.err (!%p504_p7)
}
  0x12   :  { %19 = dma.hbm_to_vmem [thread:$0]  %s643_s0, 128, %s17_s10, [#allocation3]  }
  0x13   :  { %s508_s25 = scalar_lea.hbm %s644_s1, 4352 }
  0x14   :  { %p509_p8 = scmp.ne.s32.totalorder %s644_s1, %s508_s25  ;;  %p512_p9 = scmp.lt.u32.totalorder %s508_s25, %s644_s1 }
  0x16   :  { %p514_p10 = pnand %p512_p9, %p509_p8 }
  0x18   :  { %517 = shalt.err (!%p514_p10)
}
  0x19   :  { %s518_s30 = scalar_lea.vmem %s581_s12, 4352  ;;  %p523_p12 = scmp.lt.s32.totalorder %s581_s12, %s581_s12 }
  0x1a   :  { %p519_p11 = scmp.ne.s32.totalorder %s581_s12, %s518_s30  ;;  %p524_p13 = scmp.lt.s32.totalorder %s518_s30, %s518_s30 }
  0x1c   :  { %p525_p0 = por %p524_p13, %p523_p12 }
  0x1e   :  { %p526_p1 = pnand %p525_p0, %p519_p11 }
  0x20   :  { %529 = shalt.err (!%p526_p1)
}
  0x21   :  { %s560_s0 = smov 128   ;;  %s561_s3 = smov 8  }
  0x22   :  { %31 = dma.hbm_to_vmem [thread:$0]  %s644_s1, 4352, %s581_s12, [#allocation6], %s560_s0, %s560_s0, %s561_s3  }
  0x23   :  { %552 = dma.done.wait [#allocation3], 128  }
  0x24   :  { %553 = vsyncadd [#allocation3], 4294967168 }
  0x25   :  { %554 = dma.done.wait [#allocation6], 4352  }
  0x26   :  { %555 = vsyncadd [#allocation6], 4294962944  ;;  %v562_v0 = vmov 0.0   ;;  %vm563_vm0 = vmmov 0   ;;  %v564_v1 = vmov 0.0|0.0   ;;  %vm77_vm1 = vcmask 64512  }
  0x27   :  { %355 = vmatprep.subr.mxu0 %v562_v0  ;;  %357 = vmatprep.mubr.msk.f32.mxu0 %vm563_vm0, %v562_v0  ;;  %v38_v2 = vld [vmem:[#allocation5] sm:$0xff]  ;;  %v72_v3 = vld [vmem:[#allocation2] sm:$0xff]  ;;  %v39_v4 = vld [vmem:[#allocation5 + $0x8] sm:$0xff]  ;;  %v73_v49 = vlaneseq  ;;  %s565_s1 = smov [#allocation7]  }
  0x28   :  { %430 = vmatprep.subr.bf16.mxu1 %v564_v1  ;;  %392 = vmatprep.mubr.msk.f32.mxu1 %vm563_vm0, %v562_v0  ;;  %v40_v5 = vld [vmem:[#allocation5 + $0x10] sm:$0xff]  ;;  %v41_v6 = vld [vmem:[#allocation5 + $0x18] sm:$0xff]  ;;  %v42_v7 = vld [vmem:[#allocation5 + $0x20] sm:$0xff]  ;;  %s308_s6 = sshll.u32 %s565_s1, 4  ;;  %s309_s6 = int_to_ptr.vmem [resolvable:$true] %s308_s6 }
  0x29   :  { %356 = vmatpush3.msra.mxu0 %v38_v2  ;;  %v431_v8 = vpack.c.bf16 %v40_v5, %v39_v4  ;;  %v434_v9 = vpack.c.bf16 %v42_v7, %v41_v6  ;;  %v43_v10 = vld [vmem:[#allocation5 + $0x28] sm:$0xff]  ;;  %v44_v11 = vld [vmem:[#allocation5 + $0x30] sm:$0xff]  ;;  %v45_v13 = vld [vmem:[#allocation5 + $0x38] sm:$0xff]  ;;  %v74_v50 = vshrl.u32 %v73_v49, 7  ;;  %s530_s7 = scalar_lea.vmem %s309_s6, 128  ;;  %p535_p3 = scmp.lt.s32.totalorder %s309_s6, %s309_s6 }
  0x2a   :  { %358 = vmatmul.mubr.msk.f32.vlgmr.msra.gmra.mrb[0].mxu0 %vm77_vm1, %v72_v3  ;;  %454 = vmatprep.subr.bf16.mxu0 %v564_v1  ;;  %v437_v12 = vpack.c.bf16 %v44_v11, %v43_v10  ;;  %v46_v14 = vld [vmem:[#allocation5 + $0x40] sm:$0xff]  ;;  %v47_v16 = vld [vmem:[#allocation5 + $0x48] sm:$0xff]  ;;  %v48_v17 = vld [vmem:[#allocation5 + $0x50] sm:$0xff]  ;;  %p531_p2 = scmp.ne.s32.totalorder %s309_s6, %s530_s7  ;;  %p536_p4 = scmp.lt.s32.totalorder %s530_s7, %s530_s7 }
  0x2b   :  { %427 = vmatprep.mubr.msk.f32.mxu0 %vm563_vm0, %v562_v0  ;;  %432 = vmatpush3.bf16.msra.mxu1 %v431_v8  ;;  %v440_v15 = vpack.c.bf16 %v46_v14, %v45_v13  ;;  %v443_v18 = vpack.c.bf16 %v48_v17, %v47_v16  ;;  %v49_v19 = vld [vmem:[#allocation5 + $0x58] sm:$0xff]  ;;  %v50_v20 = vld [vmem:[#allocation5 + $0x60] sm:$0xff]  ;;  %v51_v22 = vld [vmem:[#allocation5 + $0x68] sm:$0xff]  ;;  %v75_v51 = vsub.s32 0, %v74_v50  ;;  %v154_v61 = vsub.s32 1, %v74_v50 }
  0x2c   :  { %433 = vmatprep.subr.bf16.mxu1 %v564_v1  ;;  %v446_v21 = vpack.c.bf16 %v50_v20, %v49_v19  ;;  %v52_v23 = vld [vmem:[#allocation5 + $0x70] sm:$0xff]  ;;  %v53_v25 = vld [vmem:[#allocation5 + $0x78] sm:$0xff]  ;;  %v54_v26 = vld [vmem:[#allocation5 + $0x80] sm:$0xff]  ;;  %v229_v3 = vsub.s32 2, %v74_v50  ;;  %p537_p5 = por %p536_p4, %p535_p3 }
  0x2d   :  { %v449_v24 = vpack.c.bf16 %v52_v23, %v51_v22  ;;  %v452_v27 = vpack.c.bf16 %v54_v26, %v53_v25  ;;  %v55_v28 = vld [vmem:[#allocation5 + $0x88] sm:$0xff]  ;;  %v56_v29 = vld [vmem:[#allocation5 + $0x90] sm:$0xff]  ;;  %v57_v30 = vld [vmem:[#allocation5 + $0x98] sm:$0xff] }
  0x2e   :  { %v455_v31 = vpack.c.bf16 %v56_v29, %v55_v28  ;;  %v58_v32 = vld [vmem:[#allocation5 + $0xa0] sm:$0xff]  ;;  %v59_v34 = vld [vmem:[#allocation5 + $0xa8] sm:$0xff]  ;;  %v60_v35 = vld [vmem:[#allocation5 + $0xb0] sm:$0xff]  ;;  %p538_p6 = pnand %p537_p5, %p531_p2 }
  0x2f   :  { %435 = vmatpush3.bf16.msra.mxu1 %v434_v9  ;;  %v458_v33 = vpack.c.bf16 %v58_v32, %v57_v30  ;;  %v461_v36 = vpack.c.bf16 %v60_v35, %v59_v34  ;;  %v61_v37 = vld [vmem:[#allocation5 + $0xb8] sm:$0xff]  ;;  %v62_v38 = vld [vmem:[#allocation5 + $0xc0] sm:$0xff]  ;;  %v63_v40 = vld [vmem:[#allocation5 + $0xc8] sm:$0xff] }
  0x30   :  { %436 = vmatprep.subr.bf16.mxu1 %v564_v1  ;;  %456 = vmatpush3.bf16.msra.mxu0 %v455_v31  ;;  %v464_v39 = vpack.c.bf16 %v62_v38, %v61_v37  ;;  %v64_v41 = vld [vmem:[#allocation5 + $0xd0] sm:$0xff]  ;;  %v65_v43 = vld [vmem:[#allocation5 + $0xd8] sm:$0xff]  ;;  %v66_v44 = vld [vmem:[#allocation5 + $0xe0] sm:$0xff] }
  0x31   :  { %457 = vmatprep.subr.bf16.mxu0 %v564_v1  ;;  %v467_v42 = vpack.c.bf16 %v64_v41, %v63_v40  ;;  %v470_v45 = vpack.c.bf16 %v66_v44, %v65_v43  ;;  %v67_v46 = vld [vmem:[#allocation5 + $0xe8] sm:$0xff]  ;;  %v68_v47 = vld [vmem:[#allocation5 + $0xf0] sm:$0xff]  ;;  %v69_v58 = vld [vmem:[#allocation5 + $0xf8] sm:$0xff] }
  0x32   :  { %v473_v48 = vpack.c.bf16 %v68_v47, %v67_v46  ;;  %v71_v52 = vld [vmem:[#allocation5 + $0x108] sm:$0xff]  ;;  %v70_v59 = vld [vmem:[#allocation5 + $0x100] sm:$0xff] }
  0x33   :  { %438 = vmatpush3.bf16.msra.mxu1 %v437_v12  ;;  %v76_v53 = vrot.slane %v71_v52, %v75_v51  ;;  %v476_v60 = vpack.c.bf16 %v70_v59, %v69_v58  ;;  %v155_v62 = vrot.slane %v71_v52, %v154_v61  ;;  %v230_v4 = vrot.slane %v71_v52, %v229_v3 }
  0x34   :  { %439 = vmatprep.subr.bf16.mxu1 %v564_v1  ;;  %459 = vmatpush3.bf16.msra.mxu0 %v458_v33 }
  0x35   :  { %460 = vmatprep.subr.bf16.mxu0 %v564_v1 }
  0x37   :  { %441 = vmatpush3.bf16.msra.mxu1 %v440_v15 }
  0x38   :  { %442 = vmatprep.subr.bf16.mxu1 %v564_v1  ;;  %462 = vmatpush3.bf16.msra.mxu0 %v461_v36 }
  0x39   :  { %463 = vmatprep.subr.bf16.mxu0 %v564_v1 }
  0x3b   :  { %444 = vmatpush3.bf16.msra.mxu1 %v443_v18 }
  0x3c   :  { %445 = vmatprep.subr.bf16.mxu1 %v564_v1  ;;  %465 = vmatpush3.bf16.msra.mxu0 %v464_v39 }
  0x3d   :  { %466 = vmatprep.subr.bf16.mxu0 %v564_v1 }
  0x3f   :  { %447 = vmatpush3.bf16.msra.mxu1 %v446_v21 }
  0x40   :  { %448 = vmatprep.subr.bf16.mxu1 %v564_v1  ;;  %468 = vmatpush3.bf16.msra.mxu0 %v467_v42 }
  0x41   :  { %469 = vmatprep.subr.bf16.mxu0 %v564_v1 }
  0x43   :  { %450 = vmatpush3.bf16.msra.mxu1 %v449_v24 }
  0x44   :  { %451 = vmatprep.subr.bf16.mxu1 %v564_v1  ;;  %471 = vmatpush3.bf16.msra.mxu0 %v470_v45 }
  0x45   :  { %472 = vmatprep.subr.bf16.mxu0 %v564_v1 }
  0x47   :  { %453 = vmatpush3.bf16.msra.mxu1 %v452_v27 }
  0x48   :  { %474 = vmatpush3.bf16.msra.mxu0 %v473_v48 }
  0x49   :  { %475 = vmatprep.subr.bf16.mxu0 %v564_v1 }
  0x4c   :  { %477 = vmatpush3.bf16.msra.mxu0 %v476_v60 }
  0xfd   :  { %v147_v54 = vpop.f32.mrb[0].mxu0 }
  0xfe   :  { %v148_v55 = vadd.f32 %v147_v54, %v76_v53  ;;  %v359_v56 = vpop.f32.mrb[1].mxu0 }
 0x100   :  { %v151_v57 = vmax.f32 %v148_v55, 0.0 }
 0x102   :  { %393 = vmatmul.mubr.f32.vlgmr.msra.gmra.mrb[0].mxu1 %v151_v57 }
 0x1d5   :  { %v222_v63 = vpop.f32.mrb[0].mxu1 }
 0x1d6   :  { %v223_v0 = vadd.f32 %v222_v63, %v155_v62  ;;  %v394_v2 = vpop.f32.mrb[1].mxu1 }
 0x1d8   :  { %v226_v1 = vmax.f32 %v223_v0, 0.0 }
 0x1da   :  { %428 = vmatmul.mubr.f32.vlgmr.msra.gmra.mrb[2].mxu0 %v226_v1 }
 0x2ad   :  { %v297_v5 = vpop.f32.mrb[2].mxu0 }
 0x2ae   :  { %v298_v6 = vadd.f32 %v297_v5, %v230_v4  ;;  %v429_v7 = vpop.f32.mrb[3].mxu0 }
 0x2b0   :  { %301 = vst [vmem:[#allocation7] sm:$0xff] %v298_v6 }
 0x2b1   :  { %541 = shalt.err (!%p538_p6)
}
 0x2b2   :  { %s542_s10 = scalar_lea.hbm %s645_s2, 128 }
 0x2b3   :  { %p543_p7 = scmp.ne.s32.totalorder %s645_s2, %s542_s10  ;;  %p546_p8 = scmp.lt.u32.totalorder %s542_s10, %s645_s2 }
 0x2b5   :  { %p548_p9 = pnand %p546_p8, %p543_p7 }
 0x2b7   :  { %551 = shalt.err (!%p548_p9)
}
 0x2b8   :  { %311 = dma.vmem_to_hbm [thread:$0]  %s309_s6, 128, %s645_s2, [#allocation4]  }
 0x2b9   :  { %556 = dma.done.wait [#allocation4], 128  }
 0x2ba   :  { %557 = vsyncadd [#allocation4], 4294967168 }
 0x2bb   :  { %315 = vsyncpa [#allocation3], 1 }
 0x2bc   :  { %316 = vsyncpa [#allocation6], 1 }
 0x2bd   :  { %317 = vsyncpa [#allocation4], 1 }

</bundles_post_ra>
